<compile_context>
chip_gen: v5e
topology: v5e:2x2
jax: 0.10.0
libtpu: 0.0.40
codegen_flags: <defaults>
</compile_context>

<pallas_src>
import functools

import jax
import jax.numpy as jnp
from jax.experimental import pallas as pl
from jax.experimental.pallas import tpu as pltpu


def _stroke_embed_kernel(xp_ref, w1_ref, b1_ref, w2_ref, b2_ref, o_ref):
    # xp_ref: [TM/PACK, PACK*d_in]   (f32; cast to compute dtype in-kernel)
    # w1_ref: [PACK*d_in, PACK*32]   (block-diagonal, compute dtype)
    # b1_ref: [1, PACK*32]           (f32)
    # w2_ref: [PACK*32, PACK*emb]    (block-diagonal, compute dtype)
    # b2_ref: [1, PACK*emb]          (f32)
    # o_ref : [TM/PACK, PACK*emb]    (f32, fully lane dense for emb=16)
    x = xp_ref[...].astype(w1_ref.dtype)
    h = jnp.dot(x, w1_ref[...], preferred_element_type=jnp.float32)
    h = jnp.maximum(h + b1_ref[...], 0.0)                     # bias + ReLU in f32
    y = jnp.dot(h.astype(w2_ref.dtype), w2_ref[...],
                preferred_element_type=jnp.float32)
    o_ref[...] = (y + b2_ref[...]).astype(o_ref.dtype)


def _round_up(x, m):
    return (x + m - 1) // m * m


@functools.partial(jax.jit, static_argnames=("block_rows", "compute_dtype"))
def stroke_embedding_forward(x, w1, b1, w2, b2, *, block_rows=32768,
                             compute_dtype=jnp.bfloat16):
    """Fused fc1 -> ReLU -> fc2.

    x: [..., input_dim] f32, w1: [input_dim, 32], b1: [32],
    w2: [32, embedding_dim], b2: [embedding_dim]  ->  [..., embedding_dim] f32.
    Weights are stored transposed w.r.t. the PyTorch module (y = x @ W + b).
    """
    lead = x.shape[:-1]
    d_in = x.shape[-1]
    x2 = x.reshape(-1, d_in)
    n = x2.shape[0]
    hidden = w1.shape[1]
    emb = w2.shape[1]
    if 128 % emb != 0:
        # TODO(synk): for emb not dividing 128 fall back to pack=1 (masked stores).
        raise NotImplementedError("lane packing assumes 128 % embedding_dim == 0")
    pack = 128 // emb                      # rows packed into one lane-dense row

    # Row tile (in original-row units); multiple of 8*pack so the packed block's
    # sublane dim stays a multiple of 8.
    bm = min(_round_up(block_rows, 8 * pack), _round_up(n, 8 * pack))
    n_pad = _round_up(n, bm)

    # Pad N (tail rows sliced off at the end) and pack `pack` consecutive rows
    # per packed row -- a free reshape of the contiguous row-major array.
    x_p = x2 if n_pad == n else jnp.pad(x2, ((0, n_pad - n), (0, 0)))
    x_packed = x_p.reshape(n_pad // pack, pack * d_in)

    # Block-diagonal weights: kron(I_pack, W).  Tiny (<= 128 KiB), VMEM-resident.
    eye = jnp.eye(pack, dtype=jnp.float32)
    w1_bd = jnp.kron(eye, w1.astype(jnp.float32)).astype(compute_dtype)
    w2_bd = jnp.kron(eye, w2.astype(jnp.float32)).astype(compute_dtype)
    b1_t = jnp.tile(b1.astype(jnp.float32), pack).reshape(1, pack * hidden)
    b2_t = jnp.tile(b2.astype(jnp.float32), pack).reshape(1, pack * emb)

    bm_p = bm // pack                      # packed rows per grid step
    grid = (n_pad // bm,)

    out_packed = pl.pallas_call(
        _stroke_embed_kernel,
        out_shape=jax.ShapeDtypeStruct((n_pad // pack, pack * emb), jnp.float32),
        grid=grid,
        in_specs=[
            pl.BlockSpec((bm_p, pack * d_in), lambda i: (i, 0)),
            # Constant index_maps: weights/biases stay resident in VMEM.
            pl.BlockSpec((pack * d_in, pack * hidden), lambda i: (0, 0)),
            pl.BlockSpec((1, pack * hidden), lambda i: (0, 0)),
            pl.BlockSpec((pack * hidden, pack * emb), lambda i: (0, 0)),
            pl.BlockSpec((1, pack * emb), lambda i: (0, 0)),
        ],
        out_specs=pl.BlockSpec((bm_p, pack * emb), lambda i: (i, 0)),
        compiler_params=pltpu.CompilerParams(
            dimension_semantics=("parallel",),  # v7x: row tiles across both TCs
        ),
    )(x_packed, w1_bd, b1_t, w2_bd, b2_t)

    # Free reshape back to [N, emb]; drop padded tail rows.
    out = out_packed.reshape(n_pad, emb)[:n]
    return out.reshape(lead + (emb,))


def reference_forward(x, w1, b1, w2, b2):
    h = jnp.maximum(x @ w1 + b1, 0.0)
    return h @ w2 + b2


if __name__ == "__main__":
    input_dim = 6
    hidden_dim = 32
    embedding_dim = 16
    num_strokes = 200          # deliberately not a multiple of pack/tile size

    key = jax.random.PRNGKey(0)
    kx, kw1, kb1, kw2, kb2 = jax.random.split(key, 5)

    # Deterministic synthetic parameters (shapes follow the module __init__).
    x = jax.random.normal(kx, (num_strokes, input_dim), dtype=jnp.float32)
    w1 = jax.random.normal(kw1, (input_dim, hidden_dim), dtype=jnp.float32) * 0.1
    b1 = jax.random.normal(kb1, (hidden_dim,), dtype=jnp.float32) * 0.1
    w2 = jax.random.normal(kw2, (hidden_dim, embedding_dim), dtype=jnp.float32) * 0.1
    b2 = jax.random.normal(kb2, (embedding_dim,), dtype=jnp.float32) * 0.1

    ref = reference_forward(x, w1, b1, w2, b2)

    # Tight correctness check: f32 compute mode.
    out_f32 = jax.block_until_ready(
        stroke_embedding_forward(x, w1, b1, w2, b2, compute_dtype=jnp.float32))
    assert out_f32.shape == (num_strokes, embedding_dim)
    assert jnp.allclose(out_f32, ref, atol=2e-5, rtol=2e-5)

    # Fast path (default): bf16 weights, f32 accumulation.
    out_bf16 = jax.block_until_ready(stroke_embedding_forward(x, w1, b1, w2, b2))
    assert out_bf16.shape == (num_strokes, embedding_dim)
    assert jnp.allclose(out_bf16, ref, atol=5e-2, rtol=5e-2)

    print("KERNEL_OK")
</pallas_src>

<mosaic_0001>
module attributes {stable_mosaic.version = 11 : i64} {
  func.func @_stroke_embed_kernel(%arg0: i32, %arg1: memref<32x48xf32, #tpu.memory_space<vmem>>, %arg2: memref<48x256xf32, #tpu.memory_space<vmem>>, %arg3: memref<1x256xf32, #tpu.memory_space<vmem>>, %arg4: memref<256x128xf32, #tpu.memory_space<vmem>>, %arg5: memref<1x128xf32, #tpu.memory_space<vmem>>, %arg6: memref<32x128xf32, #tpu.memory_space<vmem>>) attributes {dimension_semantics = [#tpu.dimension_semantics<parallel>], iteration_bounds = array<i64: 1>, scalar_prefetch = 0 : i64, scratch_operands = 0 : i64, tpu.core_type = #tpu.core_type<tc>, window_params = [{transform_indices = @transform_0, window_bounds = array<i64: 32, 48>}, {pipeline_mode = #tpu.pipeline_mode<synchronous>, transform_indices = @transform_1, window_bounds = array<i64: 48, 256>}, {pipeline_mode = #tpu.pipeline_mode<synchronous>, transform_indices = @transform_2, window_bounds = array<i64: 1, 256>}, {pipeline_mode = #tpu.pipeline_mode<synchronous>, transform_indices = @transform_3, window_bounds = array<i64: 256, 128>}, {pipeline_mode = #tpu.pipeline_mode<synchronous>, transform_indices = @transform_4, window_bounds = array<i64: 1, 128>}, {transform_indices = @transform_5, window_bounds = array<i64: 32, 128>}]} {
    %c0 = arith.constant 0 : index
    %c0_0 = arith.constant 0 : index
    %0 = vector.load %arg1[%c0, %c0_0] : memref<32x48xf32, #tpu.memory_space<vmem>>, vector<32x48xf32>
    %c0_1 = arith.constant 0 : index
    %c0_2 = arith.constant 0 : index
    %1 = vector.load %arg2[%c0_1, %c0_2] : memref<48x256xf32, #tpu.memory_space<vmem>>, vector<48x256xf32>
    %cst = arith.constant dense<0.000000e+00> : vector<32x256xf32>
    %2 = tpu.matmul %0, %1, %cst {dimension_numbers = #tpu.dot_dimension_numbers<[1], [0], [0], [1], [0, 0, 1, 1], [], []>} : vector<32x48xf32>, vector<48x256xf32>, vector<32x256xf32> -> vector<32x256xf32>
    %c0_3 = arith.constant 0 : index
    %c0_4 = arith.constant 0 : index
    %3 = vector.load %arg3[%c0_3, %c0_4] : memref<1x256xf32, #tpu.memory_space<vmem>>, vector<1x256xf32>
    %4 = vector.broadcast %3 : vector<1x256xf32> to vector<32x256xf32>
    %5 = arith.addf %2, %4 : vector<32x256xf32>
    %cst_5 = arith.constant 0.000000e+00 : f32
    %6 = vector.broadcast %cst_5 : f32 to vector<32x256xf32>
    %7 = arith.maximumf %5, %6 : vector<32x256xf32>
    %c0_6 = arith.constant 0 : index
    %c0_7 = arith.constant 0 : index
    %8 = vector.load %arg4[%c0_6, %c0_7] : memref<256x128xf32, #tpu.memory_space<vmem>>, vector<256x128xf32>
    %cst_8 = arith.constant dense<0.000000e+00> : vector<32x128xf32>
    %9 = tpu.matmul %7, %8, %cst_8 {dimension_numbers = #tpu.dot_dimension_numbers<[1], [0], [0], [1], [0, 0, 1, 1], [], []>} : vector<32x256xf32>, vector<256x128xf32>, vector<32x128xf32> -> vector<32x128xf32>
    %c0_9 = arith.constant 0 : index
    %c0_10 = arith.constant 0 : index
    %10 = vector.load %arg5[%c0_9, %c0_10] : memref<1x128xf32, #tpu.memory_space<vmem>>, vector<1x128xf32>
    %11 = vector.broadcast %10 : vector<1x128xf32> to vector<32x128xf32>
    %12 = arith.addf %9, %11 : vector<32x128xf32>
    %c0_11 = arith.constant 0 : index
    %c0_12 = arith.constant 0 : index
    %13 = vector.load %arg6[%c0_11, %c0_12] : memref<32x128xf32, #tpu.memory_space<vmem>>, vector<32x128xf32>
    tpu.vector_store %arg6[%c0_11, %c0_12], %12 {strides = array<i32>} : memref<32x128xf32, #tpu.memory_space<vmem>>, vector<32x128xf32>,
    return
  }
  func.func @transform_0(%arg0: i32) -> (i32, i32) {
    %c0_i32 = arith.constant 0 : i32
    %c0_i32_0 = arith.constant 0 : i32
    return %arg0, %c0_i32 : i32, i32
  }
  func.func @transform_1(%arg0: i32) -> (i32, i32) {
    %c0_i32 = arith.constant 0 : i32
    %c0_i32_0 = arith.constant 0 : i32
    %c0_i32_1 = arith.constant 0 : i32
    return %c0_i32, %c0_i32_0 : i32, i32
  }
  func.func @transform_2(%arg0: i32) -> (i32, i32) {
    %c0_i32 = arith.constant 0 : i32
    %c0_i32_0 = arith.constant 0 : i32
    %c0_i32_1 = arith.constant 0 : i32
    return %c0_i32, %c0_i32_0 : i32, i32
  }
  func.func @transform_3(%arg0: i32) -> (i32, i32) {
    %c0_i32 = arith.constant 0 : i32
    %c0_i32_0 = arith.constant 0 : i32
    %c0_i32_1 = arith.constant 0 : i32
    return %c0_i32, %c0_i32_0 : i32, i32
  }
  func.func @transform_4(%arg0: i32) -> (i32, i32) {
    %c0_i32 = arith.constant 0 : i32
    %c0_i32_0 = arith.constant 0 : i32
    %c0_i32_1 = arith.constant 0 : i32
    return %c0_i32, %c0_i32_0 : i32, i32
  }
  func.func @transform_5(%arg0: i32) -> (i32, i32) {
    %c0_i32 = arith.constant 0 : i32
    %c0_i32_0 = arith.constant 0 : i32
    return %arg0, %c0_i32 : i32, i32
  }
}

</mosaic_0001>

<bundles_post_ra>
// kernel: tile.13
= control target key start
LH: loop header
LB: loop body
LE: loop exit
PB: predicated region body
PF: predicated region fallthrough
CT: control target
= control target key end

     0   :  { %s22_s0 = inlined_call_operand.vmem [shape: f32[32], index: 0, kind: input, shape index: {}]   ;;  %s23_s1 = inlined_call_operand.vmem [shape: f32[8,32], index: 1, kind: output, shape index: {}]  }
   0x1   :  { %v4_v0 = vld [vmem:[%s22_s0] ss:$0 sm:$0xff] }
   0x2   :  { %5 = vst [vmem:[%s23_s1] sm:$0xff] %v4_v0 }

// kernel: tile.14
= control target key start
LH: loop header
LB: loop body
LE: loop exit
PB: predicated region body
PF: predicated region fallthrough
CT: control target
= control target key end

     0   :  { %s7_s6 = smov 3  ;;  %s46_s9 = smov 96   ;;  %vm4_vm0 = vcmask 261120   ;;  %vm11_vm1 = vcmask 1048320   ;;  %vm18_vm2 = vcmask 785920   ;;  %vm25_vm3 = vcmask 523520   ;;  %s77_s0 = inlined_call_operand.vmem [shape: f32[8,32], index: 0, kind: input, shape index: {}]   ;;  %s78_s1 = inlined_call_operand.vmem [shape: f32[1,256], index: 1, kind: output, shape index: {}]  }
   0x1   :  { %v39_v0 = vld [vmem:[%s77_s0 + $0x3] ss:$4 sm:%s7_s6]   ;;  %s21_s10 = smov 3  ;;  %s14_s13 = smov 3 }
   0x2   :  { %9 = vrot.lane.b32.xlu0 %v39_v0, %s46_s9  ;;  %v41_v1 = vld [vmem:[%s77_s0 + $0x1] ss:$4 sm:%s21_s10]   ;;  %s47_s14 = smov 32   ;;  %s48_s17 = smov 64  }
   0x3   :  { %23 = vrot.lane.b32.xlu1 %v41_v1, %s47_s14  ;;  %v40_v2 = vld [vmem:[%s77_s0 + $0x2] ss:$4 sm:%s14_s13]   ;;  %s2_s18 = smov 3 }
   0x4   :  { %v3_v3 = vld [vmem:[%s77_s0] ss:$4 sm:%s2_s18]  }
   0x5   :  { %5 = vst.msk [vmem:[#allocation0] ss:$8 sm:$0x3] %vm4_vm0, %v3_v3  }
   0xa   :  { %16 = vrot.lane.b32.xlu0 %v40_v2, %s48_s17 }
  0x74   :  { %v10_v4 = vpop.permute.xlu0 %9  }
  0x75   :  { %12 = vst.msk [vmem:[#allocation0] ss:$8 sm:$0x3] %vm11_vm1, %v10_v4   ;;  %v24_v5 = vpop.permute.xlu1 %23  }
  0x7c   :  { %v17_v6 = vpop.permute.xlu0 %16  }
  0x7d   :  { %19 = vst.msk [vmem:[#allocation0] ss:$8 sm:$0x3] %vm18_vm2, %v17_v6  }
  0x7e   :  { %26 = vst.msk [vmem:[#allocation0] ss:$8 sm:$0x3] %vm25_vm3, %v24_v5  }
  0x85   :  { %v29_v7 = vld [vmem:[#allocation0] sm:$0x1]  ;;  %v34_v8 = vld [vmem:[#allocation0 + $0x8] sm:$0x1] }
  0x86   :  { %32 = vst [vmem:[%s78_s1] sm:$0x1] %v29_v7 }
  0x87   :  { %42 = vst [vmem:[%s78_s1 + $0x1] sm:$0x1] %v34_v8 }

// kernel: tile.18
= control target key start
LH: loop header
LB: loop body
LE: loop exit
PB: predicated region body
PF: predicated region fallthrough
CT: control target
= control target key end

     0   :  { %s22_s0 = inlined_call_operand.vmem [shape: f32[16], index: 0, kind: input, shape index: {}]   ;;  %s23_s1 = inlined_call_operand.vmem [shape: f32[8,16], index: 1, kind: output, shape index: {}]  }
   0x1   :  { %v4_v0 = vld [vmem:[%s22_s0] ss:$0 sm:$0xff] }
   0x2   :  { %5 = vst [vmem:[%s23_s1] sm:$0xff] %v4_v0 }

// kernel: tile.19
= control target key start
LH: loop header
LB: loop body
LE: loop exit
PB: predicated region body
PF: predicated region fallthrough
CT: control target
= control target key end

     0   :  { %s67_s10 = smov 112   ;;  %s68_s11 = smov 80   ;;  %vm3_vm0 = vcmask 130048   ;;  %vm9_vm1 = vcmask 1048448   ;;  %vm15_vm2 = vcmask 917248   ;;  %vm21_vm3 = vcmask 786048   ;;  %s111_s0 = inlined_call_operand.vmem [shape: f32[8,16], index: 0, kind: input, shape index: {}]   ;;  %s112_s1 = inlined_call_operand.vmem [shape: f32[1,128], index: 1, kind: output, shape index: {}]  }
   0x1   :  { %v53_v0 = vld [vmem:[%s111_s0 + $0x7] sm:$0x1]   ;;  %v55_v1 = vld [vmem:[%s111_s0 + $0x5] sm:$0x1]   ;;  %v57_v2 = vld [vmem:[%s111_s0 + $0x3] sm:$0x1]  }
   0x2   :  { %7 = vrot.lane.b32.xlu0 %v53_v0, %s67_s10  ;;  %19 = vrot.lane.b32.xlu1 %v55_v1, %s68_s11  ;;  %s69_s14 = smov 48   ;;  %v54_v3 = vld [vmem:[%s111_s0 + $0x6] sm:$0x1]   ;;  %v56_v4 = vld [vmem:[%s111_s0 + $0x4] sm:$0x1]   ;;  %s70_s21 = smov 96  }
   0x3   :  { %31 = vrot.lane.b32.xlu2 %v57_v2, %s69_s14  ;;  %v58_v5 = vld [vmem:[%s111_s0 + $0x2] sm:$0x1]   ;;  %s71_s22 = smov 64   ;;  %s72_s23 = smov 32   ;;  %v59_v6 = vld [vmem:[%s111_s0 + $0x1] sm:$0x1]  }
   0x4   :  { %s73_s26 = smov 16   ;;  %v2_v7 = vld [vmem:[%s111_s0] sm:$0x1]   ;;  %vm27_vm4 = vcmask 654848   ;;  %vm33_vm5 = vcmask 523648   ;;  %vm39_vm6 = vcmask 392448  }
   0x5   :  { %4 = vst.msk [vmem:[#allocation0] sm:$0x1] %vm3_vm0, %v2_v7   ;;  %vm45_vm7 = vcmask 261248  }
   0xa   :  { %13 = vrot.lane.b32.xlu0 %v54_v3, %s70_s21  ;;  %25 = vrot.lane.b32.xlu1 %v56_v4, %s71_s22 }
   0xb   :  { %37 = vrot.lane.b32.xlu2 %v58_v5, %s72_s23 }
  0x12   :  { %43 = vrot.lane.b32.xlu0 %v59_v6, %s73_s26 }
  0x5d   :  { %v32_v8 = vpop.permute.xlu2 %31  }
  0x65   :  { %v38_v9 = vpop.permute.xlu2 %37  }
  0x74   :  { %v8_v10 = vpop.permute.xlu0 %7   ;;  %v20_v11 = vpop.permute.xlu1 %19  }
  0x75   :  { %10 = vst.msk [vmem:[#allocation0] sm:$0x1] %vm9_vm1, %v8_v10  }
  0x7c   :  { %v14_v12 = vpop.permute.xlu0 %13   ;;  %v26_v13 = vpop.permute.xlu1 %25  }
  0x7d   :  { %16 = vst.msk [vmem:[#allocation0] sm:$0x1] %vm15_vm2, %v14_v12  }
  0x7e   :  { %22 = vst.msk [vmem:[#allocation0] sm:$0x1] %vm21_vm3, %v20_v11  }
  0x7f   :  { %28 = vst.msk [vmem:[#allocation0] sm:$0x1] %vm27_vm4, %v26_v13  }
  0x80   :  { %34 = vst.msk [vmem:[#allocation0] sm:$0x1] %vm33_vm5, %v32_v8  }
  0x81   :  { %40 = vst.msk [vmem:[#allocation0] sm:$0x1] %vm39_vm6, %v38_v9  }
  0x84   :  { %v44_v14 = vpop.permute.xlu0 %43  }
  0x85   :  { %46 = vst.msk [vmem:[#allocation0] sm:$0x1] %vm45_vm7, %v44_v14  }
  0x8c   :  { %v49_v15 = vld [vmem:[#allocation0] sm:$0x1] }
  0x8d   :  { %52 = vst [vmem:[%s112_s1] sm:$0x1] %v49_v15 }

// kernel: stroke_embedding_forward.1
= control target key start
LH: loop header
LB: loop body
LE: loop exit
PB: predicated region body
PF: predicated region fallthrough
CT: control target
= control target key end

     0   :  { %vm42_vm0 = vcmask 392192   ;;  %s464_s1 = inlined_call_operand.vmem [shape: f32[48,256], index: 1, kind: input, shape index: {}]   ;;  %s465_s3 = inlined_call_operand.vmem [shape: f32[256,128], index: 3, kind: input, shape index: {}]   ;;  %s466_s0 = inlined_call_operand.vmem [shape: f32[32,48], index: 0, kind: input, shape index: {}]   ;;  %s467_s4 = inlined_call_operand.vmem [shape: f32[1,128], index: 4, kind: input, shape index: {}]   ;;  %s468_s2 = inlined_call_operand.vmem [shape: f32[1,256], index: 2, kind: input, shape index: {}]   ;;  %s469_s5 = inlined_call_operand.vmem [shape: f32[32,128], index: 5, kind: output, shape index: {}]  }
   0x1   :  { %v34_v0 = vld [vmem:[%s464_s1 + $0x50] sm:$0xff]  ;;  %v32_v1 = vld [vmem:[%s464_s1 + $0x40] sm:$0xff]  ;;  %v35_v2 = vld [vmem:[%s464_s1 + $0x58] sm:$0xff] }
   0x2   :  { %65 = vmatpush.msra.mxu0 %v34_v0  ;;  %94 = vmatpush.msra.mxu1 %v35_v2  ;;  %v33_v3 = vld [vmem:[%s464_s1 + $0x48] sm:$0xff]  ;;  %v30_v4 = vld [vmem:[%s464_s1 + $0x30] sm:$0xff]  ;;  %v31_v5 = vld [vmem:[%s464_s1 + $0x38] sm:$0xff] }
   0x3   :  { %v28_v6 = vld [vmem:[%s464_s1 + $0x20] sm:$0xff]  ;;  %v29_v7 = vld [vmem:[%s464_s1 + $0x28] sm:$0xff]  ;;  %v136_v8 = vld [vmem:[%s465_s3 + $0x78] sm:$0xff] }
   0x4   :  { %66 = vmatpush.msra.mxu0 %v32_v1  ;;  %95 = vmatpush.msra.mxu1 %v33_v3  ;;  %v26_v9 = vld [vmem:[%s464_s1 + $0x10] sm:$0xff]  ;;  %v27_v10 = vld [vmem:[%s464_s1 + $0x18] sm:$0xff]  ;;  %v24_v13 = vld [vmem:[%s464_s1] sm:$0xff] }
   0x5   :  { %231 = vmatpush.msra.mxu2 %v136_v8  ;;  %v135_v11 = vld [vmem:[%s465_s3 + $0x70] sm:$0xff]  ;;  %v152_v12 = vld [vmem:[%s465_s3 + $0xf8] sm:$0xff]  ;;  %v25_v14 = vld [vmem:[%s464_s1 + $0x8] sm:$0xff] }
   0x6   :  { %67 = vmatpush.msra.mxu0 %v30_v4  ;;  %96 = vmatpush.msra.mxu1 %v31_v5  ;;  %v20_v15 = vld [vmem:[%s466_s0] sm:$0xff]  ;;  %v134_v16 = vld [vmem:[%s465_s3 + $0x68] sm:$0xff]  ;;  %v151_v17 = vld [vmem:[%s465_s3 + $0xf0] sm:$0xff] }
   0x7   :  { %232 = vmatpush.msra.mxu2 %v135_v11  ;;  %247 = vmatpush.msra.mxu3 %v152_v12  ;;  %v133_v18 = vld [vmem:[%s465_s3 + $0x60] sm:$0xff]  ;;  %v150_v19 = vld [vmem:[%s465_s3 + $0xe8] sm:$0xff]  ;;  %v132_v20 = vld [vmem:[%s465_s3 + $0x58] sm:$0xff] }
   0x8   :  { %68 = vmatpush.msra.mxu0 %v28_v6  ;;  %97 = vmatpush.msra.mxu1 %v29_v7  ;;  %v149_v21 = vld [vmem:[%s465_s3 + $0xe0] sm:$0xff]  ;;  %v21_v22 = vld [vmem:[%s466_s0 + $0x8] sm:$0xff]  ;;  %v131_v23 = vld [vmem:[%s465_s3 + $0x50] sm:$0xff] }
   0x9   :  { %233 = vmatpush.msra.mxu2 %v134_v16  ;;  %248 = vmatpush.msra.mxu3 %v151_v17  ;;  %v148_v24 = vld [vmem:[%s465_s3 + $0xd8] sm:$0xff]  ;;  %v147_v25 = vld [vmem:[%s465_s3 + $0xd0] sm:$0xff]  ;;  %v130_v26 = vld [vmem:[%s465_s3 + $0x48] sm:$0xff] }
   0xa   :  { %69 = vmatpush.msra.mxu0 %v26_v9  ;;  %98 = vmatpush.msra.mxu1 %v27_v10  ;;  %v146_v27 = vld [vmem:[%s465_s3 + $0xc8] sm:$0xff]  ;;  %v129_v28 = vld [vmem:[%s465_s3 + $0x40] sm:$0xff]  ;;  %v22_v30 = vld [vmem:[%s466_s0 + $0x10] sm:$0xff] }
   0xb   :  { %234 = vmatpush.msra.mxu2 %v133_v18  ;;  %249 = vmatpush.msra.mxu3 %v150_v19  ;;  %v145_v29 = vld [vmem:[%s465_s3 + $0xc0] sm:$0xff]  ;;  %v128_v31 = vld [vmem:[%s465_s3 + $0x38] sm:$0xff]  ;;  %v127_v33 = vld [vmem:[%s465_s3 + $0x30] sm:$0xff] }
   0xc   :  { %70 = vmatpush.msra.mxu0 %v24_v13  ;;  %99 = vmatpush.msra.mxu1 %v25_v14  ;;  %v144_v32 = vld [vmem:[%s465_s3 + $0xb8] sm:$0xff]  ;;  %v143_v34 = vld [vmem:[%s465_s3 + $0xb0] sm:$0xff]  ;;  %v126_v35 = vld [vmem:[%s465_s3 + $0x28] sm:$0xff] }
   0xd   :  { %223 = vmatmul.msk.f32.vlgmr.msra.gmra.mxu0 %vm42_vm0, %v20_v15  ;;  %227 = vmatmul.msk.f32.vlgmr.msra.gmra.mxu1 %vm42_vm0, %v20_v15  ;;  %v142_v36 = vld [vmem:[%s465_s3 + $0xa8] sm:$0xff]  ;;  %v125_v37 = vld [vmem:[%s465_s3 + $0x20] sm:$0xff]  ;;  %v23_v39 = vld [vmem:[%s466_s0 + $0x18] sm:$0xff] }
   0xe   :  { %157 = vmatpush.msrb.mxu0 %v136_v8  ;;  %186 = vmatpush.msrb.mxu1 %v152_v12  ;;  %v141_v38 = vld [vmem:[%s465_s3 + $0xa0] sm:$0xff]  ;;  %v124_v40 = vld [vmem:[%s465_s3 + $0x18] sm:$0xff]  ;;  %v123_v41 = vld [vmem:[%s465_s3 + $0x10] sm:$0xff] }
   0xf   :  { %235 = vmatpush.msra.mxu2 %v132_v20  ;;  %250 = vmatpush.msra.mxu3 %v149_v21  ;;  %v140_v42 = vld [vmem:[%s465_s3 + $0x98] sm:$0xff]  ;;  %v122_v43 = vld [vmem:[%s465_s3 + $0x8] sm:$0xff]  ;;  %v139_v44 = vld [vmem:[%s465_s3 + $0x90] sm:$0xff] }
  0x10   :  { %158 = vmatpush.msrb.mxu0 %v135_v11  ;;  %187 = vmatpush.msrb.mxu1 %v151_v17  ;;  %v121_v45 = vld [vmem:[%s465_s3] sm:$0xff]  ;;  %v138_v46 = vld [vmem:[%s465_s3 + $0x88] sm:$0xff] }
  0x11   :  { %236 = vmatpush.msra.mxu2 %v131_v23  ;;  %251 = vmatpush.msra.mxu3 %v148_v24  ;;  %v137_v47 = vld [vmem:[%s465_s3 + $0x80] sm:$0xff] }
  0x12   :  { %159 = vmatpush.msrb.mxu0 %v134_v16  ;;  %188 = vmatpush.msrb.mxu1 %v150_v19  ;;  %v36_v48 = vld [vmem:[%s468_s2] sm:$0x3] }
  0x13   :  { %237 = vmatpush.msra.mxu2 %v130_v26  ;;  %252 = vmatpush.msra.mxu3 %v147_v25  ;;  %v38_v49 = vperm.slane %v36_v48, 0  ;;  %v39_v50 = vperm.slane %v36_v48, 1  ;;  %v263_v11 = vld [vmem:[%s467_s4] ss:$0 sm:$0xff] }
  0x14   :  { %160 = vmatpush.msrb.mxu0 %v133_v18  ;;  %189 = vmatpush.msrb.mxu1 %v149_v21 }
  0x15   :  { %224 = vmatmul.msk.f32.gmra.mxu0 %vm42_vm0, %v21_v22  ;;  %228 = vmatmul.msk.f32.gmra.mxu1 %vm42_vm0, %v21_v22 }
  0x16   :  { %161 = vmatpush.msrb.mxu0 %v132_v20  ;;  %190 = vmatpush.msrb.mxu1 %v148_v24 }
  0x17   :  { %238 = vmatpush.msra.mxu2 %v129_v28  ;;  %253 = vmatpush.msra.mxu3 %v146_v27 }
  0x18   :  { %162 = vmatpush.msrb.mxu0 %v131_v23  ;;  %191 = vmatpush.msrb.mxu1 %v147_v25 }
  0x19   :  { %239 = vmatpush.msra.mxu2 %v128_v31  ;;  %254 = vmatpush.msra.mxu3 %v145_v29 }
  0x1a   :  { %163 = vmatpush.msrb.mxu0 %v130_v26  ;;  %192 = vmatpush.msrb.mxu1 %v146_v27 }
  0x1b   :  { %240 = vmatpush.msra.mxu2 %v127_v33  ;;  %255 = vmatpush.msra.mxu3 %v144_v32 }
  0x1c   :  { %164 = vmatpush.msrb.mxu0 %v129_v28  ;;  %193 = vmatpush.msrb.mxu1 %v145_v29 }
  0x1d   :  { %225 = vmatmul.msk.f32.gmra.mxu0 %vm42_vm0, %v22_v30  ;;  %229 = vmatmul.msk.f32.gmra.mxu1 %vm42_vm0, %v22_v30 }
  0x1e   :  { %165 = vmatpush.msrb.mxu0 %v128_v31  ;;  %194 = vmatpush.msrb.mxu1 %v144_v32 }
  0x1f   :  { %241 = vmatpush.msra.mxu2 %v126_v35  ;;  %256 = vmatpush.msra.mxu3 %v143_v34 }
  0x20   :  { %166 = vmatpush.msrb.mxu0 %v127_v33  ;;  %195 = vmatpush.msrb.mxu1 %v143_v34 }
  0x21   :  { %242 = vmatpush.msra.mxu2 %v125_v37  ;;  %257 = vmatpush.msra.mxu3 %v142_v36 }
  0x22   :  { %167 = vmatpush.msrb.mxu0 %v126_v35  ;;  %196 = vmatpush.msrb.mxu1 %v142_v36 }
  0x23   :  { %243 = vmatpush.msra.mxu2 %v124_v40  ;;  %258 = vmatpush.msra.mxu3 %v141_v38 }
  0x24   :  { %168 = vmatpush.msrb.mxu0 %v125_v37  ;;  %197 = vmatpush.msrb.mxu1 %v141_v38 }
  0x25   :  { %226 = vmatmul.msk.f32.gmra.mxu0 %vm42_vm0, %v23_v39  ;;  %230 = vmatmul.msk.f32.gmra.mxu1 %vm42_vm0, %v23_v39 }
  0x26   :  { %169 = vmatpush.msrb.mxu0 %v124_v40  ;;  %198 = vmatpush.msrb.mxu1 %v140_v42 }
  0x27   :  { %244 = vmatpush.msra.mxu2 %v123_v41  ;;  %259 = vmatpush.msra.mxu3 %v140_v42 }
  0x28   :  { %170 = vmatpush.msrb.mxu0 %v123_v41  ;;  %199 = vmatpush.msrb.mxu1 %v139_v44 }
  0x29   :  { %245 = vmatpush.msra.mxu2 %v122_v43  ;;  %260 = vmatpush.msra.mxu3 %v139_v44 }
  0x2a   :  { %171 = vmatpush.msrb.mxu0 %v122_v43  ;;  %200 = vmatpush.msrb.mxu1 %v138_v46 }
  0x2b   :  { %246 = vmatpush.msra.mxu2 %v121_v45  ;;  %261 = vmatpush.msra.mxu3 %v138_v46 }
  0x2c   :  { %172 = vmatpush.msrb.mxu0 %v121_v45  ;;  %201 = vmatpush.msrb.mxu1 %v137_v47 }
  0x2d   :  { %262 = vmatpush.msra.mxu3 %v137_v47 }
  0x8a   :  { %v72_v51 = vpop.f32.mrf.mxu0  ;;  %v101_v52 = vpop.f32.mrf.mxu1 }
  0x8b   :  { %v73_v53 = vadd.f32 %v72_v51, %v38_v49  ;;  %v102_v54 = vadd.f32 %v101_v52, %v39_v50 }
  0x8d   :  { %v113_v55 = vmax.f32 %v73_v53, 0.0  ;;  %v114_v56 = vmax.f32 %v102_v54, 0.0 }
  0x8f   :  { %173 = vmatmul.f32.vlgmr.msrb.gmra.mxu0 %v113_v55  ;;  %202 = vmatmul.f32.vlgmr.msrb.gmra.mxu1 %v114_v56 }
  0x92   :  { %v75_v57 = vpop.f32.mrf.mxu0  ;;  %v104_v58 = vpop.f32.mrf.mxu1 }
  0x93   :  { %v76_v59 = vadd.f32 %v75_v57, %v38_v49  ;;  %v105_v60 = vadd.f32 %v104_v58, %v39_v50 }
  0x95   :  { %v115_v61 = vmax.f32 %v76_v59, 0.0  ;;  %v116_v62 = vmax.f32 %v105_v60, 0.0 }
  0x97   :  { %176 = vmatmul.f32.vlgmr.msra.gmra.mxu2 %v115_v61  ;;  %205 = vmatmul.f32.vlgmr.msra.gmra.mxu3 %v116_v62 }
  0x9a   :  { %v78_v63 = vpop.f32.mrf.mxu0  ;;  %v107_v0 = vpop.f32.mrf.mxu1 }
  0x9b   :  { %v79_v1 = vadd.f32 %v78_v63, %v38_v49  ;;  %v108_v2 = vadd.f32 %v107_v0, %v39_v50 }
  0x9d   :  { %v117_v3 = vmax.f32 %v79_v1, 0.0  ;;  %v118_v4 = vmax.f32 %v108_v2, 0.0 }
  0x9f   :  { %179 = vmatmul.f32.gmra.mxu2 %v117_v3  ;;  %208 = vmatmul.f32.gmra.mxu3 %v118_v4 }
  0xa2   :  { %v81_v5 = vpop.f32.mrf.mxu0  ;;  %v110_v6 = vpop.f32.mrf.mxu1 }
  0xa3   :  { %v82_v7 = vadd.f32 %v81_v5, %v38_v49  ;;  %v111_v8 = vadd.f32 %v110_v6, %v39_v50 }
  0xa5   :  { %v119_v9 = vmax.f32 %v82_v7, 0.0  ;;  %v120_v10 = vmax.f32 %v111_v8, 0.0 }
  0xa7   :  { %182 = vmatmul.f32.gmra.mxu2 %v119_v9  ;;  %211 = vmatmul.f32.gmra.mxu3 %v120_v10 }
 0x10c   :  { %v174_v12 = vpop.f32.mrf.mxu0  ;;  %v203_v13 = vpop.f32.mrf.mxu1 }
 0x10d   :  { %v175_v14 = vadd.f32 %v263_v11, %v174_v12 }
 0x10f   :  { %v204_v15 = vadd.f32 %v203_v13, %v175_v14 }
 0x111   :  { %215 = vst [vmem:[%s469_s5] sm:$0xff] %v204_v15 }
 0x11a   :  { %v177_v16 = vpop.f32.mrf.mxu2  ;;  %v206_v17 = vpop.f32.mrf.mxu3 }
 0x11b   :  { %v178_v18 = vadd.f32 %v263_v11, %v177_v16 }
 0x11d   :  { %v207_v19 = vadd.f32 %v206_v17, %v178_v18 }
 0x11f   :  { %216 = vst [vmem:[%s469_s5 + $0x8] sm:$0xff] %v207_v19 }
 0x122   :  { %v180_v20 = vpop.f32.mrf.mxu2  ;;  %v209_v21 = vpop.f32.mrf.mxu3 }
 0x123   :  { %v181_v22 = vadd.f32 %v263_v11, %v180_v20 }
 0x125   :  { %v210_v23 = vadd.f32 %v209_v21, %v181_v22 }
 0x127   :  { %217 = vst [vmem:[%s469_s5 + $0x10] sm:$0xff] %v210_v23 }
 0x12a   :  { %v183_v24 = vpop.f32.mrf.mxu2  ;;  %v212_v25 = vpop.f32.mrf.mxu3 }
 0x12b   :  { %v184_v26 = vadd.f32 %v263_v11, %v183_v24 }
 0x12d   :  { %v213_v27 = vadd.f32 %v212_v25, %v184_v26 }
 0x12f   :  { %218 = vst [vmem:[%s469_s5 + $0x18] sm:$0xff] %v213_v27 }

</bundles_post_ra>
